<compile_context>
chip_gen: v5e
topology: v5e:2x2
jax: 0.10.0
libtpu: 0.0.40
codegen_flags: <defaults>
</compile_context>

<pallas_src>
import jax
import jax.numpy as jnp
from jax.experimental import pallas as pl
from jax.experimental.pallas import tpu as pltpu


# -----------------------------------------------------------------------------
# Fused kernel: per-batch FiLM linears (tiny dot products, computed once per
# batch element) + feature-wise modulation (memory-bound VPU work).
#   grid = (B, cdiv(HW, tile));  x block = (C, tile) with HW on the lane axis.
# -----------------------------------------------------------------------------
def _film_fused_kernel(ctx_ref, w_ref, b_ref, x_ref, o_ref, gb_sc):
    b_idx = pl.program_id(0)

    @pl.when(pl.program_id(1) == 0)
    def _():
        # (1 + gamma | beta) = W_cat @ ctx[b] + (b_g + 1 | b_b), computed as a
        # sublane-broadcast multiply + lane reduction (VPU + XLU).  This
        # ~0.2 MFLOP dot product is free filler in a memory-bound kernel and
        # runs once per batch element; the result persists in scratch across
        # the "arbitrary" HW-tile axis.
        ctx_row = ctx_ref[pl.ds(b_idx, 1), :]                      # (1, ctx_dim)
        gb_sc[...] = (jnp.sum(w_ref[...] * ctx_row, axis=-1, keepdims=True)
                      + b_ref[...])                                # (2C, 1) f32

    c = o_ref.shape[0]
    g = gb_sc[0:c, :]          # (C, 1): 1 + gamma (the +1 was folded into the bias)
    bta = gb_sc[c:, :]         # (C, 1): beta
    # (C, tile) * (C, 1) + (C, 1): lane-broadcast mul+add -> pure 2-op VPU path.
    o_ref[...] = (x_ref[...] * g + bta).astype(o_ref.dtype)


def _choose_tile(b, hw, tile_hw):
    """Pick the HW-lane tile: big (amortize ~0.35us/step), multiple of 128 for
    lane-dense stores (or the full extent), and >= 2 total grid steps so both
    v7x TensorCores get work."""
    if hw <= tile_hw:
        tile = hw                          # full extent: always a legal block dim
    else:
        tile = max(128, (tile_hw // 128) * 128)
    if b * pl.cdiv(hw, tile) < 2 and hw >= 256:
        tile = max(128, ((hw // 2 + 127) // 128) * 128)
    return tile


# -----------------------------------------------------------------------------
# FiLMBlock forward: x = base_block(x); x = FiLM(x, context)
# -----------------------------------------------------------------------------
def film_block_forward(params, x_nchw, context, *, tile_hw=2048):
    # TODO(synk): base_block (an external MBConv/MobileNetV2-style module) is not
    # provided here; it is treated as identity so only the FiLM modulation runs.
    b, c, h, w = x_nchw.shape
    hw = h * w
    x3 = x_nchw.reshape(b, c, hw)                                   # free contiguous view

    # Tiny one-time param fusion: concat gamma|beta weights and fold the +1.0
    # into the gamma bias so the kernel does a pure  x * g + b.
    w_cat = jnp.concatenate([params["wg"], params["wb"]], axis=0)            # (2C, ctx)
    b_cat = jnp.concatenate([params["bg"] + 1.0, params["bb"]])[:, None]     # (2C, 1)

    ctx_dim = context.shape[1]
    tile = _choose_tile(b, hw, tile_hw)
    grid = (b, pl.cdiv(hw, tile))

    # VMEM budget: double-buffered x-in + out blocks = 4 * C*tile*4 B (4 MiB at
    # C=128, tile=2048) + resident weights (~0.4 MiB) -- well under the scoped
    # default on all of v5e/v6e/v7x.  Re-derive (and set vmem_limit_bytes) if
    # C or tile_hw grow substantially on v7x's 64 MiB VMEM.
    y = pl.pallas_call(
        _film_fused_kernel,
        out_shape=jax.ShapeDtypeStruct((b, c, hw), x_nchw.dtype),
        grid=grid,
        in_specs=[
            pl.BlockSpec((b, ctx_dim), lambda i, j: (0, 0)),        # context, resident
            pl.BlockSpec((2 * c, ctx_dim), lambda i, j: (0, 0)),    # fused weights, resident
            pl.BlockSpec((2 * c, 1), lambda i, j: (0, 0)),          # fused bias, resident
            pl.BlockSpec((pl.Squeezed(), c, tile), lambda i, j: (i, 0, j)),
        ],
        out_specs=pl.BlockSpec((pl.Squeezed(), c, tile), lambda i, j: (i, 0, j)),
        scratch_shapes=[pltpu.VMEM((2 * c, 1), jnp.float32)],
        compiler_params=pltpu.CompilerParams(
            dimension_semantics=("parallel", "arbitrary")),
    )(context, w_cat, b_cat, x3)

    return y.reshape(b, c, h, w)                                    # free contiguous view


# -----------------------------------------------------------------------------
# Parameters (deterministic, in-script), stored in nn.Linear layout:
# weight (out_features=C, in_features=ctx_dim), bias (C,).
# NOTE: PyTorch's FiLM zero-inits gamma/beta weights (identity modulation);
# small non-zero values are used here so the kernel math is actually exercised.
# -----------------------------------------------------------------------------
def init_params(key, *, ctx_dim=384, channels=128):
    kg, kbg, kb, kbb = jax.random.split(key, 4)
    s = 0.02
    return {
        "wg": s * jax.random.normal(kg, (channels, ctx_dim), jnp.float32),
        "bg": s * jax.random.normal(kbg, (channels,), jnp.float32),
        "wb": s * jax.random.normal(kb, (channels, ctx_dim), jnp.float32),
        "bb": s * jax.random.normal(kbb, (channels,), jnp.float32),
    }


# Pure-JAX reference for the correctness check.
def reference_forward(params, x_nchw, context):
    gamma = context @ params["wg"].T + params["bg"]                 # (B, C)
    beta = context @ params["wb"].T + params["bb"]                  # (B, C)
    return x_nchw * (1.0 + gamma)[:, :, None, None] + beta[:, :, None, None]


if __name__ == "__main__":
    key = jax.random.PRNGKey(0)
    k_x, k_ctx, k_p = jax.random.split(key, 3)

    B, C, H, W = 2, 128, 16, 16        # H*W=256 -> lane-dense (B, C, HW) blocks
    CTX_DIM = 384                      # FiLMBlock hardcodes FiLM(384, C)

    x = jax.random.normal(k_x, (B, C, H, W), jnp.float32)           # NCHW (PyTorch-style)
    context = jax.random.normal(k_ctx, (B, CTX_DIM), jnp.float32)
    params = init_params(k_p, ctx_dim=CTX_DIM, channels=C)

    out = jax.block_until_ready(film_block_forward(params, x, context))
    ref = jax.block_until_ready(reference_forward(params, x, context))

    assert out.shape == (B, C, H, W), out.shape
    assert jnp.allclose(out, ref, rtol=1e-5, atol=1e-5), "mismatch vs. JAX reference"

    print("KERNEL_OK")
</pallas_src>

<mosaic_0001>
module attributes {stable_mosaic.version = 11 : i64} {
  func.func @_film_fused_kernel(%arg0: i32, %arg1: i32, %arg2: memref<2x384xf32, #tpu.memory_space<vmem>>, %arg3: memref<256x384xf32, #tpu.memory_space<vmem>>, %arg4: memref<256x1xf32, #tpu.memory_space<vmem>>, %arg5: memref<1x128x256xf32, #tpu.memory_space<vmem>>, %arg6: memref<1x128x256xf32, #tpu.memory_space<vmem>>, %arg7: memref<256x1xf32, #tpu.memory_space<vmem>>) attributes {dimension_semantics = [#tpu.dimension_semantics<parallel>, #tpu.dimension_semantics<arbitrary>], iteration_bounds = array<i64: 2, 1>, scalar_prefetch = 0 : i64, scratch_operands = 1 : i64, tpu.core_type = #tpu.core_type<tc>, window_params = [{pipeline_mode = #tpu.pipeline_mode<synchronous>, transform_indices = @transform_0, window_bounds = array<i64: 2, 384>}, {pipeline_mode = #tpu.pipeline_mode<synchronous>, transform_indices = @transform_1, window_bounds = array<i64: 256, 384>}, {pipeline_mode = #tpu.pipeline_mode<synchronous>, transform_indices = @transform_2, window_bounds = array<i64: 256, 1>}, {transform_indices = @transform_3, window_bounds = array<i64: 1, 128, 256>}, {transform_indices = @transform_4, window_bounds = array<i64: 1, 128, 256>}]} {
    %c0_i32 = arith.constant 0 : i32
    %0 = arith.cmpi eq, %arg1, %c0_i32 : i32
    %1 = arith.extui %0 : i1 to i32
    %c0_i32_0 = arith.constant 0 : i32
    %2 = arith.cmpi ne, %1, %c0_i32_0 : i32
    scf.if %2 {
      %14 = arith.index_cast %arg0 : i32 to index
      %c0_9 = arith.constant 0 : index
      %15 = vector.load %arg2[%14, %c0_9] : memref<2x384xf32, #tpu.memory_space<vmem>>, vector<1x384xf32>
      %c0_10 = arith.constant 0 : index
      %c0_11 = arith.constant 0 : index
      %16 = vector.load %arg3[%c0_10, %c0_11] : memref<256x384xf32, #tpu.memory_space<vmem>>, vector<256x384xf32>
      %17 = vector.broadcast %15 : vector<1x384xf32> to vector<256x384xf32>
      %18 = arith.mulf %16, %17 : vector<256x384xf32>
      %cst = arith.constant dense<0.000000e+00> : vector<256xf32>
      %19 = vector.multi_reduction <add>, %18, %cst [1] : vector<256x384xf32> to vector<256xf32>
      %20 = vector.shape_cast %19 : vector<256xf32> to vector<256x1xf32>
      %c0_12 = arith.constant 0 : index
      %c0_13 = arith.constant 0 : index
      %21 = vector.load %arg4[%c0_12, %c0_13] : memref<256x1xf32, #tpu.memory_space<vmem>>, vector<256x1xf32>
      %22 = arith.addf %20, %21 : vector<256x1xf32>
      %c0_14 = arith.constant 0 : index
      %c0_15 = arith.constant 0 : index
      %23 = vector.load %arg7[%c0_14, %c0_15] : memref<256x1xf32, #tpu.memory_space<vmem>>, vector<256x1xf32>
      tpu.vector_store %arg7[%c0_14, %c0_15], %22 {strides = array<i32>} : memref<256x1xf32, #tpu.memory_space<vmem>>, vector<256x1xf32>,
    } else {
    }
    %c0 = arith.constant 0 : index
    %c0_1 = arith.constant 0 : index
    %3 = vector.load %arg7[%c0, %c0_1] : memref<256x1xf32, #tpu.memory_space<vmem>>, vector<128x1xf32>
    %c128 = arith.constant 128 : index
    %c0_2 = arith.constant 0 : index
    %4 = vector.load %arg7[%c128, %c0_2] : memref<256x1xf32, #tpu.memory_space<vmem>>, vector<128x1xf32>
    %c0_3 = arith.constant 0 : index
    %c0_4 = arith.constant 0 : index
    %c0_5 = arith.constant 0 : index
    %5 = vector.load %arg5[%c0_3, %c0_4, %c0_5] : memref<1x128x256xf32, #tpu.memory_space<vmem>>, vector<1x128x256xf32>
    %6 = vector.shape_cast %5 : vector<1x128x256xf32> to vector<128x256xf32>
    %7 = vector.broadcast %3 : vector<128x1xf32> to vector<128x256xf32>
    %8 = arith.mulf %6, %7 : vector<128x256xf32>
    %9 = vector.broadcast %4 : vector<128x1xf32> to vector<128x256xf32>
    %10 = arith.addf %8, %9 : vector<128x256xf32>
    %c0_6 = arith.constant 0 : index
    %c0_7 = arith.constant 0 : index
    %c0_8 = arith.constant 0 : index
    %11 = vector.load %arg6[%c0_6, %c0_7, %c0_8] : memref<1x128x256xf32, #tpu.memory_space<vmem>>, vector<1x128x256xf32>
    %12 = vector.shape_cast %11 : vector<1x128x256xf32> to vector<128x256xf32>
    %13 = vector.shape_cast %10 : vector<128x256xf32> to vector<1x128x256xf32>
    tpu.vector_store %arg6[%c0_6, %c0_7, %c0_8], %13 {strides = array<i32>} : memref<1x128x256xf32, #tpu.memory_space<vmem>>, vector<1x128x256xf32>,
    return
  }
  func.func @transform_0(%arg0: i32, %arg1: i32) -> (i32, i32) {
    %c0_i32 = arith.constant 0 : i32
    %c0_i32_0 = arith.constant 0 : i32
    %c0_i32_1 = arith.constant 0 : i32
    return %c0_i32, %c0_i32_0 : i32, i32
  }
  func.func @transform_1(%arg0: i32, %arg1: i32) -> (i32, i32) {
    %c0_i32 = arith.constant 0 : i32
    %c0_i32_0 = arith.constant 0 : i32
    %c0_i32_1 = arith.constant 0 : i32
    return %c0_i32, %c0_i32_0 : i32, i32
  }
  func.func @transform_2(%arg0: i32, %arg1: i32) -> (i32, i32) {
    %c0_i32 = arith.constant 0 : i32
    %c0_i32_0 = arith.constant 0 : i32
    %c0_i32_1 = arith.constant 0 : i32
    return %c0_i32, %c0_i32_0 : i32, i32
  }
  func.func @transform_3(%arg0: i32, %arg1: i32) -> (i32, i32, i32) {
    %c0_i32 = arith.constant 0 : i32
    %c0_i32_0 = arith.constant 0 : i32
    return %arg0, %c0_i32, %arg1 : i32, i32, i32
  }
  func.func @transform_4(%arg0: i32, %arg1: i32) -> (i32, i32, i32) {
    %c0_i32 = arith.constant 0 : i32
    %c0_i32_0 = arith.constant 0 : i32
    return %arg0, %c0_i32, %arg1 : i32, i32, i32
  }
}

</mosaic_0001>

<bundles_post_ra>
// kernel: tpu_custom_call.1
= control target key start
LH: loop header
LB: loop body
LE: loop exit
PB: predicated region body
PF: predicated region fallthrough
CT: control target
= control target key end

     0   :  { %s1925_s0 = inlined_call_operand.vmem [shape: f32[2,384], index: 0, kind: input, shape index: {}]   ;;  %s1926_s1 = inlined_call_operand.hbm [shape: f32[256,384], index: 1, kind: input, shape index: {}]   ;;  %s1927_s2 = inlined_call_operand.vmem [shape: f32[256,1], index: 2, kind: input, shape index: {}]   ;;  %s1928_s3 = inlined_call_operand.hbm [shape: f32[2,128,256], index: 3, kind: input, shape index: {}]   ;;  %s1929_s4 = inlined_call_operand.hbm [shape: f32[2,128,256], index: 4, kind: output, shape index: {}]  }
   0x1   :  { %1931 = sst [smem:[#allocation13_spill]] %s1926_s1 }
   0x2   :  { %9 = vsyncpa [#allocation4], 0 }
   0x3   :  { %10 = vsyncpa [#allocation7], 0 }
   0x4   :  { %12 = vsyncpa [#allocation7 + $0x1], 0 }
   0x5   :  { %13 = vsyncpa [#allocation5], 0 }
   0x6   :  { %15 = vsyncpa [#allocation5 + $0x1], 0  ;;  %s1416_s15 = smov 0   ;;  %s1418_s16 = smov 0  }
   0x7   :  { %s1420_s17 = smov 0   ;;  %s1422_s18 = smov 0  }
   0x8   :  { %s1424_s19 = smov 0   ;;  %s1426_s20 = smov 0  }
   0x9 LB: > { %s1132_s21 = sadd.s32 4294967295, %s1381_s20   ;;  %s1133_s22 = sadd.s32 4294967294, %s1381_s20   ;;  %s1381_s20 = sphi %s1426_s20, %s21_s20   ;;  %s1377_s19 = sphi %s1424_s19, %s1946_s19   ;;  %s1373_s18 = sphi %s1422_s18, %s1945_s18   ;;  %s1369_s17 = sphi %s1420_s17, %s1944_s17   ;;  %s1365_s16 = sphi %s1418_s16, %s1943_s16   ;;  %s1361_s15 = sphi %s1416_s15, %s1942_s15  }
   0xa   : > { %p118_p0 = scmp.ne.s32.totalorder %s1365_s16, %s1361_s15  ;;  %p1450_p1 = scmp.eq.s32.totalorder %s1132_s21, 0 }
   0xb   : > { %p1454_p2 = scmp.eq.s32.totalorder %s1132_s21, 1  ;;  %p150_p3 = scmp.eq.s32.totalorder %s1133_s22, 1 }
   0xc   : > { %p1460_p4 = por %p1450_p1, %p118_p0  ;;  %p1134_p5 = scmp.ge.s32.totalorder %s1381_s20, 1 }
   0xd   : > { %p1465_p6 = por %p150_p3, %p118_p0  ;;  %p157_p7 = scmp.lt.s32.totalorder %s1381_s20, 3 }
   0xe   : > { %s1936_s1 = sld [smem:[#allocation13_spill]]  ;;  %s1383_s5 = smov [#allocation3]  }
   0xf   : > { %p1473_p8 = pnand %p1134_p5, %p157_p7  ;;  %s173_s6 = sshll.u32 %s1383_s5, 4  ;;  %s174_s6 = int_to_ptr.vmem [resolvable:$true] %s173_s6 }
  0x10   : > { %p1136_p11 = scmp.ge.s32.totalorder %s1381_s20, 2  ;;  %s1384_s7 = smov 384  }
  0x11   : > { %p1160_p9 = pneg %p1473_p8  ;;  %s1385_s8 = smov 24  }
  0x12   : > { %s33_s9 = sadd.s32 1, %s1377_s19  ;;  %s105_s10 = sadd.s32 1, %s1369_s17 }
  0x13   : > { %p1161_p10 = pnand %p1160_p9, %p1450_p1  ;;  %p35_p12 = scmp.ge.s32.totalorder %s33_s9, 2 }
  0x14   : > { %s171_s29 = sshll.u32 %s1936_s1, 4  ;;  %p112_p13 = scmp.ne.s32.totalorder %s1369_s17, %s1365_s16  ;;  %s172_s29 = int_to_ptr.hbm [resolvable:$true] %s171_s29 }
  0x15   : > { %1163 = dma.hbm_to_vmem [thread:$0]  (!%p1161_p10), %s172_s29, 12288, %s174_s6, [#allocation4], %s1384_s7, %s1384_s7, %s1385_s8  }
  0x16   : > { %p113_p0 = scmp.eq.s32.totalorder %s1381_s20, 0  ;;  %s1948_s9 = smov (%p35_p12, %s33_s9), 0 }
  0x17   : > { %1938 = sst [smem:[#allocation12_spill]] %s1948_s9  ;;  %p1495_p5 = por %p1454_p2, %p112_p13 }
  0x18   : > { %p1489_p3 = por %p113_p0, %p112_p13  ;;  %s100_s13 = ssub.s32 %s1377_s19, %s1948_s9 }
  0x19   : > { %p1173_p7 = scmp.lt.s32.totalorder %s1381_s20, 2  ;;  %p103_p9 = scmp.eq.s32.totalorder %s100_s13, 0 }
  0x1a   : > { %s190_s14 = sand.u32 1, %s1369_s17   ;;  %s1150_s27 = sshll.u32 %s1377_s19, 8 }
  0x1b   : > { %s1137_s21 = sshll.u32 %s190_s14, 8  ;;  %s201_s5 = scalar_lea.hbm %s1928_s3, %s1150_s27 }
  0x1c   : > { %s1504_s22 = scalar_select %p103_p9, %s1369_s17, %s105_s10  }
  0x1d   : > { %s194_s6 = scalar_lea.vmem [#allocation6], %s1137_s21  ;;  %s202_s24 = sshll.u32 %s201_s5, 4  ;;  %s203_s24 = int_to_ptr.hbm [resolvable:$true] %s202_s24 }
  0x1e   : > { %s204_s7 = sshll.u32 %s194_s6, 4  ;;  %p1165_p2 = pnand %p1173_p7, %p1489_p3  ;;  %s205_s7 = int_to_ptr.vmem [resolvable:$true] %s204_s7 }
  0x1f   : > { %s191_s8 = scalar_lea.sflag [#allocation7], %s190_s14  ;;  %s1386_s1 = smov 256  }
  0x20   : > { %s1387_s9 = smov 16   ;;  %216 = sbr.rel (%p1473_p8) target bundleno = 385 (0x181), region = 36 }
  0x21   : > { %1167 = dma.hbm_to_vmem [thread:$0]  (!%p1165_p2), %s203_s24, 4096, %s205_s7, %s191_s8, %s1386_s1, %s1386_s1, %s1387_s9  }
  0x25   : > { %1348 = dma.done.wait (%p1450_p1), [#allocation4], 12288  }
  0x26   : > { %1350 = vsyncadd (%p1450_p1), [#allocation4], 4294955008  ;;  %s1519_s10 = sand.u32 1, %s1365_s16  }
  0x27   : > { %s1142_s11 = sshll.u32 %s1519_s10, 8  ;;  %s224_s13 = scalar_lea.sflag [#allocation7], %s1519_s10 }
  0x28   : > { %s1525_s1 = scalar_lea.vmem [#allocation6], %s1142_s11 }
  0x29   : > { %1352 = dma.done.wait (%p1460_p4), %s224_s13, 4096  }
  0x2a   : > { %1354 = vsyncadd (%p1460_p4), %s224_s13, 4294963200  ;;  %s259_s23 = sshra.s32 %s1373_s18, 1  ;;  %s262_s30 = sand.u32 1, %s1373_s18  ;;  %v280_v1 = vld [vmem:[#allocation3 + $0x60] sm:$0xff]  ;;  %v281_v2 = vld [vmem:[#allocation3 + $0x68] sm:$0xff]  ;;  %vm659_vm0 = vcmask 7168  }
  0x2b   : > { %s1144_s9 = smul.u32 6, %s259_s23  ;;  %v282_v3 = vld [vmem:[#allocation3 + $0x70] sm:$0xff]  ;;  %v275_v8 = vld [vmem:[#allocation3 + $0x38] sm:$0xff]  ;;  %v276_v9 = vld [vmem:[#allocation3 + $0x40] sm:$0xff]  ;;  %s1804_s7 = scalar_lea.vmem [#allocation8], %s1142_s11 }
  0x2c   : > { %v274_v7 = vld [vmem:[#allocation3 + $0x30] sm:$0xff]  ;;  %v268_v10 = vld [vmem:[#allocation3] sm:$0xff]  ;;  %v269_v11 = vld [vmem:[#allocation3 + $0x8] sm:$0xff]  ;;  %s1151_s11 = sshll.u32 %s1373_s18, 8  ;;  %s1027_s23 = sshll.u32 %s1804_s7, 4  ;;  %s1028_s23 = int_to_ptr.vmem [resolvable:$true] %s1027_s23 }
  0x2d   : > { %s265_s14 = sadd.s32 %s1144_s9, %s262_s30  ;;  %v270_v16 = vld [vmem:[#allocation3 + $0x10] sm:$0xff]  ;;  %v283_v17 = vld [vmem:[#allocation3 + $0x78] sm:$0xff]  ;;  %v284_v18 = vld [vmem:[#allocation3 + $0x80] sm:$0xff]  ;;  %s1026_s13 = scalar_lea.hbm %s1929_s4, %s1151_s11 }
  0x2e   : > { %s266_s28 = scalar_lea.vmem %s1925_s0, %s265_s14  ;;  %v277_v23 = vld [vmem:[#allocation3 + $0x48] sm:$0xff]  ;;  %v278_v24 = vld [vmem:[#allocation3 + $0x50] sm:$0xff]  ;;  %v271_v29 = vld [vmem:[#allocation3 + $0x18] sm:$0xff]  ;;  %s1029_s18 = sshll.u32 %s1026_s13, 4  ;;  %s1030_s18 = int_to_ptr.hbm [resolvable:$true] %s1029_s18 }
  0x2f   : > { %v267_v0 = vld [vmem:[%s266_s28] ss:$2 sm:$0x7]  ;;  %v285_v33 = vld [vmem:[#allocation3 + $0x88] sm:$0xff]  ;;  %v279_v34 = vld [vmem:[#allocation3 + $0x58] sm:$0xff]  ;;  %s1013_s30 = scalar_lea.sflag [#allocation5], %s1519_s10 }
  0x30   : > { %v1536_v4 = vperm.slane %v267_v0, 0  ;;  %v1538_v5 = vperm.slane %v267_v0, 1  ;;  %v1540_v6 = vperm.slane %v267_v0, 2  ;;  %v272_v30 = vld [vmem:[#allocation3 + $0x20] sm:$0xff]  ;;  %v273_v38 = vld [vmem:[#allocation3 + $0x28] sm:$0xff]  ;;  %v290_v52 = vld [vmem:[#allocation3 + $0xb0] sm:$0xff] }
  0x31   : > { %v292_v49 = vld [vmem:[#allocation3 + $0xc0] sm:$0xff]  ;;  %v293_v50 = vld [vmem:[#allocation3 + $0xc8] sm:$0xff]  ;;  %v286_v53 = vld [vmem:[#allocation3 + $0x90] sm:$0xff]  ;;  %s1309_s9 = sshra.s32 %s1030_s18, 4  ;;  %s1315_s27 = scalar_lea.hbm %s1929_s4, 512  ;;  %s1310_s9 = int_to_ptr.hbm [resolvable:$true] %s1309_s9 }
  0x32   : > { %v383_v12 = vmul.f32 %v1536_v4, %v280_v1  ;;  %v384_v13 = vmul.f32 %v1538_v5, %v281_v2  ;;  %v385_v14 = vmul.f32 %v1540_v6, %v282_v3  ;;  %v377_v15 = vmul.f32 %v1536_v4, %v274_v7  ;;  %v289_v51 = vld [vmem:[#allocation3 + $0xa8] sm:$0xff]  ;;  %v287_v54 = vld [vmem:[#allocation3 + $0x98] sm:$0xff]  ;;  %v294_v60 = vld [vmem:[#allocation3 + $0xd0] sm:$0xff]  ;;  %p1316_p10 = scmp.lt.s32.totalorder %s1310_s9, %s1929_s4 }
  0x33   : > { %v378_v19 = vmul.f32 %v1538_v5, %v275_v8  ;;  %v379_v20 = vmul.f32 %v1540_v6, %v276_v9  ;;  %v371_v21 = vmul.f32 %v1536_v4, %v268_v10  ;;  %v372_v22 = vmul.f32 %v1538_v5, %v269_v11  ;;  %v291_v61 = vld [vmem:[#allocation3 + $0xb8] sm:$0xff]  ;;  %v288_v1 = vld [vmem:[#allocation3 + $0xa0] sm:$0xff]  ;;  %v301_v9 = vld [vmem:[#allocation3 + $0x108] sm:$0xff] }
  0x34   : > { %v483_v25 = vadd.f32 %v384_v13, %v383_v12  ;;  %v373_v26 = vmul.f32 %v1540_v6, %v270_v16  ;;  %v386_v27 = vmul.f32 %v1536_v4, %v283_v17  ;;  %v387_v28 = vmul.f32 %v1538_v5, %v284_v18  ;;  %v302_v11 = vld [vmem:[#allocation3 + $0x110] sm:$0xff]  ;;  %v299_v13 = vld [vmem:[#allocation3 + $0xf8] sm:$0xff]  ;;  %v296_v17 = vld [vmem:[#allocation3 + $0xe0] sm:$0xff] }
  0x35   : > { %v475_v31 = vadd.f32 %v378_v19, %v377_v15  ;;  %v467_v32 = vadd.f32 %v372_v22, %v371_v21  ;;  %v380_v35 = vmul.f32 %v1536_v4, %v277_v23  ;;  %v381_v37 = vmul.f32 %v1538_v5, %v278_v24  ;;  %v298_v12 = vld [vmem:[#allocation3 + $0xf0] sm:$0xff]  ;;  %v295_v16 = vld [vmem:[#allocation3 + $0xd8] sm:$0xff] }
  0x36   : > { %v484_v36 = vadd.f32 %v483_v25, %v385_v14  ;;  %v374_v41 = vmul.f32 %v1536_v4, %v271_v29  ;;  %v375_v42 = vmul.f32 %v1538_v5, %v272_v30  ;;  %v388_v43 = vmul.f32 %v1540_v6, %v285_v33  ;;  %v300_v25 = vld [vmem:[#allocation3 + $0x100] sm:$0xff]  ;;  %v311_v30 = vld [vmem:[#allocation3 + $0x158] sm:$0xff] }
  0x37   : > { %v476_v39 = vadd.f32 %v475_v31, %v379_v20  ;;  %v468_v40 = vadd.f32 %v467_v32, %v373_v26  ;;  %v487_v44 = vadd.f32 %v387_v28, %v386_v27  ;;  %v382_v45 = vmul.f32 %v1540_v6, %v279_v34  ;;  %v303_v20 = vld [vmem:[#allocation3 + $0x118] sm:$0xff]  ;;  %v310_v27 = vld [vmem:[#allocation3 + $0x150] sm:$0xff]  ;;  %v297_v31 = vld [vmem:[#allocation3 + $0xe8] sm:$0xff] }
  0x38   : > { %485 = vadd.xlane.f32.xlu2 %v484_v36  ;;  %v479_v46 = vadd.f32 %v381_v37, %v380_v35  ;;  %v376_v47 = vmul.f32 %v1540_v6, %v273_v38  ;;  %v471_v48 = vadd.f32 %v375_v42, %v374_v41  ;;  %v395_v57 = vmul.f32 %v1536_v4, %v292_v49  ;;  %v307_v37 = vld [vmem:[#allocation3 + $0x138] sm:$0xff]  ;;  %v308_v38 = vld [vmem:[#allocation3 + $0x140] sm:$0xff] }
  0x39   : > { %477 = vadd.xlane.f32.xlu1 %v476_v39  ;;  %469 = vadd.xlane.f32.xlu0 %v468_v40  ;;  %v488_v55 = vadd.f32 %v487_v44, %v388_v43  ;;  %v396_v58 = vmul.f32 %v1538_v5, %v293_v50  ;;  %v392_v62 = vmul.f32 %v1536_v4, %v289_v51  ;;  %v304_v42 = vld [vmem:[#allocation3 + $0x120] sm:$0xff]  ;;  %v305_v43 = vld [vmem:[#allocation3 + $0x128] sm:$0xff]  ;;  %v319_v49 = vld [vmem:[#allocation3 + $0x198] sm:$0xff] }
  0x3a   : > { %v480_v56 = vadd.f32 %v479_v46, %v382_v45  ;;  %v472_v59 = vadd.f32 %v471_v48, %v376_v47  ;;  %v393_v63 = vmul.f32 %v1538_v5, %v290_v52  ;;  %v389_v0 = vmul.f32 %v1536_v4, %v286_v53  ;;  %v312_v44 = vld [vmem:[#allocation3 + $0x160] sm:$0xff]  ;;  %v309_v48 = vld [vmem:[#allocation3 + $0x148] sm:$0xff] }
  0x3b   : > { %v390_v2 = vmul.f32 %v1538_v5, %v287_v54  ;;  %v397_v3 = vmul.f32 %v1540_v6, %v294_v60  ;;  %v499_v7 = vadd.f32 %v396_v58, %v395_v57  ;;  %v394_v8 = vmul.f32 %v1540_v6, %v291_v61  ;;  %v320_v50 = vld [vmem:[#allocation3 + $0x1a0] sm:$0xff]  ;;  %v317_v58 = vld [vmem:[#allocation3 + $0x188] sm:$0xff] }
  0x3c   : > { %v495_v10 = vadd.f32 %v393_v63, %v392_v62  ;;  %v391_v14 = vmul.f32 %v1540_v6, %v288_v1  ;;  %v404_v18 = vmul.f32 %v1536_v4, %v301_v9  ;;  %v405_v21 = vmul.f32 %v1538_v5, %v302_v11  ;;  %v316_v57 = vld [vmem:[#allocation3 + $0x180] sm:$0xff]  ;;  %v321_v62 = vld [vmem:[#allocation3 + $0x1a8] sm:$0xff]  ;;  %v318_v1 = vld [vmem:[#allocation3 + $0x190] sm:$0xff] }
  0x3d   : > { %v491_v15 = vadd.f32 %v390_v2, %v389_v0  ;;  %v500_v19 = vadd.f32 %v499_v7, %v397_v3  ;;  %v401_v22 = vmul.f32 %v1536_v4, %v298_v12  ;;  %v402_v23 = vmul.f32 %v1538_v5, %v299_v13  ;;  %v313_v9 = vld [vmem:[#allocation3 + $0x168] sm:$0xff]  ;;  %v346_v11 = vld [vmem:[#allocation3 + $0x270] sm:$0xff]  ;;  %v347_v12 = vld [vmem:[#allocation3 + $0x278] sm:$0xff] }
  0x3e   : > { %v496_v24 = vadd.f32 %v495_v10, %v394_v8  ;;  %v398_v28 = vmul.f32 %v1536_v4, %v295_v16  ;;  %v399_v29 = vmul.f32 %v1538_v5, %v296_v17  ;;  %v406_v32 = vmul.f32 %v1540_v6, %v303_v20  ;;  %v348_v13 = vld [vmem:[#allocation3 + $0x280] sm:$0xff] }
  0x3f   : > { %v492_v26 = vadd.f32 %v491_v15, %v391_v14  ;;  %v511_v33 = vadd.f32 %v405_v21, %v404_v18  ;;  %v403_v34 = vmul.f32 %v1540_v6, %v300_v25  ;;  %v507_v35 = vadd.f32 %v402_v23, %v401_v22  ;;  %v314_v15 = vld [vmem:[#allocation3 + $0x170] sm:$0xff]  ;;  %v344_v20 = vld [vmem:[#allocation3 + $0x260] sm:$0xff] }
  0x40   : > { %489 = vadd.xlane.f32.xlu2 %v488_v55  ;;  %v413_v36 = vmul.f32 %v1536_v4, %v310_v27  ;;  %v414_v39 = vmul.f32 %v1538_v5, %v311_v30  ;;  %v400_v40 = vmul.f32 %v1540_v6, %v297_v31  ;;  %v503_v41 = vadd.f32 %v399_v29, %v398_v28  ;;  %v345_v29 = vld [vmem:[#allocation3 + $0x268] sm:$0xff]  ;;  %v328_v30 = vld [vmem:[#allocation3 + $0x1e0] sm:$0xff] }
  0x41   : > { %481 = vadd.xlane.f32.xlu1 %v480_v56  ;;  %473 = vadd.xlane.f32.xlu0 %v472_v59  ;;  %v410_v45 = vmul.f32 %v1536_v4, %v307_v37  ;;  %v411_v46 = vmul.f32 %v1538_v5, %v308_v38  ;;  %v512_v47 = vadd.f32 %v511_v33, %v406_v32  ;;  %v306_v59 = vld [vmem:[#allocation3 + $0x130] sm:$0xff]  ;;  %v329_v31 = vld [vmem:[#allocation3 + $0x1e8] sm:$0xff] }
  0x42   : > { %v407_v51 = vmul.f32 %v1536_v4, %v304_v42  ;;  %v408_v52 = vmul.f32 %v1538_v5, %v305_v43  ;;  %v508_v53 = vadd.f32 %v507_v35, %v403_v34  ;;  %v415_v54 = vmul.f32 %v1540_v6, %v312_v44  ;;  %v325_v38 = vld [vmem:[#allocation3 + $0x1c8] sm:$0xff]  ;;  %v326_v43 = vld [vmem:[#allocation3 + $0x1d0] sm:$0xff] }
  0x43   : > { %v523_v55 = vadd.f32 %v414_v39, %v413_v36  ;;  %v504_v56 = vadd.f32 %v503_v41, %v400_v40  ;;  %v412_v60 = vmul.f32 %v1540_v6, %v309_v48  ;;  %v519_v61 = vadd.f32 %v411_v46, %v410_v45  ;;  %v315_v36 = vld [vmem:[#allocation3 + $0x178] sm:$0xff]  ;;  %v322_v44 = vld [vmem:[#allocation3 + $0x1b0] sm:$0xff] }
  0x44   : > { %v422_v63 = vmul.f32 %v1536_v4, %v319_v49  ;;  %v423_v0 = vmul.f32 %v1538_v5, %v320_v50  ;;  %v419_v2 = vmul.f32 %v1536_v4, %v316_v57  ;;  %v420_v3 = vmul.f32 %v1538_v5, %v317_v58  ;;  %v323_v45 = vld [vmem:[#allocation3 + $0x1b8] sm:$0xff]  ;;  %v356_v50 = vld [vmem:[#allocation3 + $0x2c0] sm:$0xff]  ;;  %v353_v57 = vld [vmem:[#allocation3 + $0x2a8] sm:$0xff] }
  0x45   : > { %v409_v7 = vmul.f32 %v1540_v6, %v306_v59  ;;  %v515_v8 = vadd.f32 %v408_v52, %v407_v51  ;;  %v524_v10 = vadd.f32 %v523_v55, %v415_v54  ;;  %v424_v14 = vmul.f32 %v1540_v6, %v321_v62  ;;  %v355_v49 = vld [vmem:[#allocation3 + $0x2b8] sm:$0xff]  ;;  %v357_v51 = vld [vmem:[#allocation3 + $0x2c8] sm:$0xff]  ;;  %v340_v58 = vld [vmem:[#allocation3 + $0x240] sm:$0xff] }
  0x46   : > { %v449_v16 = vmul.f32 %v1536_v4, %v346_v11  ;;  %v450_v17 = vmul.f32 %v1538_v5, %v347_v12  ;;  %v451_v18 = vmul.f32 %v1540_v6, %v348_v13  ;;  %v520_v21 = vadd.f32 %v519_v61, %v412_v60  ;;  %v330_v59 = vld [vmem:[#allocation3 + $0x1f0] sm:$0xff]  ;;  %v324_v12 = vld [vmem:[#allocation3 + $0x1c0] sm:$0xff] }
  0x47   : > { %v535_v22 = vadd.f32 %v423_v0, %v422_v63  ;;  %v421_v25 = vmul.f32 %v1540_v6, %v318_v1  ;;  %v516_v27 = vadd.f32 %v515_v8, %v409_v7  ;;  %v416_v32 = vmul.f32 %v1536_v4, %v313_v9  ;;  %v341_v63 = vld [vmem:[#allocation3 + $0x248] sm:$0xff]  ;;  %v327_v1 = vld [vmem:[#allocation3 + $0x1d8] sm:$0xff]  ;;  %v354_v8 = vld [vmem:[#allocation3 + $0x2b0] sm:$0xff] }
  0x48   : > { %501 = vadd.xlane.f32.xlu2 %v500_v19  ;;  %v343_v19 = vld [vmem:[#allocation3 + $0x258] sm:$0xff]  ;;  %v571_v28 = vadd.f32 %v450_v17, %v449_v16  ;;  %v417_v33 = vmul.f32 %v1538_v5, %v314_v15  ;;  %v448_v34 = vmul.f32 %v1540_v6, %v345_v29  ;;  %v431_v41 = vmul.f32 %v1536_v4, %v328_v30  ;;  %v342_v9 = vld [vmem:[#allocation3 + $0x250] sm:$0xff] }
  0x49   : > { %497 = vadd.xlane.f32.xlu1 %v496_v24  ;;  %493 = vadd.xlane.f32.xlu0 %v492_v26  ;;  %v446_v23 = vmul.f32 %v1536_v4, %v343_v19  ;;  %v447_v24 = vmul.f32 %v1538_v5, %v344_v20  ;;  %v531_v26 = vadd.f32 %v420_v3, %v419_v2  ;;  %v331_v29 = vld [vmem:[#allocation3 + $0x1f8] sm:$0xff] }
  0x4a   : > { %v1601_v37 = vadd.f32 %v571_v28, %v451_v18  ;;  %v536_v40 = vadd.f32 %v535_v22, %v424_v14  ;;  %v432_v42 = vmul.f32 %v1538_v5, %v329_v31  ;;  %v527_v48 = vadd.f32 %v417_v33, %v416_v32  ;;  %v337_v18 = vld [vmem:[#allocation3 + $0x228] sm:$0xff]  ;;  %v338_v22 = vld [vmem:[#allocation3 + $0x230] sm:$0xff] }
  0x4b   : > { %v567_v35 = vadd.f32 %v447_v24, %v446_v23  ;;  %v532_v46 = vadd.f32 %v531_v26, %v421_v25  ;;  %v428_v52 = vmul.f32 %v1536_v4, %v325_v38  ;;  %v459_v54 = vmul.f32 %v1538_v5, %v356_v50  ;;  %v334_v25 = vld [vmem:[#allocation3 + $0x210] sm:$0xff]  ;;  %v335_v26 = vld [vmem:[#allocation3 + $0x218] sm:$0xff]  ;;  %v361_v32 = vld [vmem:[#allocation3 + $0x2e8] sm:$0xff] }
  0x4c   : > { %v460_v55 = vmul.f32 %v1540_v6, %v357_v51  ;;  %v429_v60 = vmul.f32 %v1538_v5, %v326_v43  ;;  %v456_v62 = vmul.f32 %v1538_v5, %v353_v57  ;;  %v443_v0 = vmul.f32 %v1536_v4, %v340_v58  ;;  %v362_v33 = vld [vmem:[#allocation3 + $0x2f0] sm:$0xff] }
  0x4d   : > { %v1603_v39 = vadd.f32 %v567_v35, %v448_v34  ;;  %v425_v2 = vmul.f32 %v1536_v4, %v322_v44  ;;  %v426_v3 = vmul.f32 %v1538_v5, %v323_v45  ;;  %v457_v13 = vmul.f32 %v1540_v6, %v354_v8  ;;  %v363_v34 = vld [vmem:[#allocation3 + $0x2f8] sm:$0xff]  ;;  %v350_v43 = vld [vmem:[#allocation3 + $0x290] sm:$0xff] }
  0x4e   : > { %v445_v15 = vmul.f32 %v1540_v6, %v342_v9  ;;  %v433_v16 = vmul.f32 %v1540_v6, %v330_v59  ;;  %v547_v17 = vadd.f32 %v432_v42, %v431_v41  ;;  %v543_v24 = vadd.f32 %v429_v60, %v428_v52  ;;  %v349_v42 = vld [vmem:[#allocation3 + $0x288] sm:$0xff]  ;;  %v351_v52 = vld [vmem:[#allocation3 + $0x298] sm:$0xff]  ;;  %v360_v9 = vld [vmem:[#allocation3 + $0x2e0] sm:$0xff] }
  0x4f   : > { %v539_v28 = vadd.f32 %v426_v3, %v425_v2  ;;  %v440_v31 = vmul.f32 %v1536_v4, %v337_v18  ;;  %v464_v38 = vmul.f32 %v1536_v4, %v361_v32  ;;  %v466_v41 = vmul.f32 %v1540_v6, %v363_v34  ;;  %v333_v59 = vld [vmem:[#allocation3 + $0x208] sm:$0xff]  ;;  %v359_v8 = vld [vmem:[#allocation3 + $0x2d8] sm:$0xff]  ;;  %v603_v34 = vld [vmem:[%s1927_s2 + $0x40] sm:$0xff] }
  0x50   : > { %513 = vadd.xlane.f32.xlu2 %v512_v47  ;;  %v418_v47 = vmul.f32 %v1540_v6, %v315_v36  ;;  %v548_v35 = vadd.f32 %v547_v17, %v433_v16  ;;  %v332_v36 = vld [vmem:[#allocation3 + $0x200] sm:$0xff]  ;;  %v441_v44 = vmul.f32 %v1538_v5, %v338_v22  ;;  %v437_v45 = vmul.f32 %v1536_v4, %v334_v25  ;;  %v596_v25 = vld [vmem:[%s1927_s2 + $0x8] sm:$0xff] }
  0x51   : > { %509 = vadd.xlane.f32.xlu1 %v508_v53  ;;  %505 = vadd.xlane.f32.xlu0 %v504_v56  ;;  %v458_v53 = vmul.f32 %v1536_v4, %v355_v49  ;;  %v352_v56 = vld [vmem:[#allocation3 + $0x2a0] sm:$0xff]  ;;  %v438_v49 = vmul.f32 %v1538_v5, %v335_v26  ;;  %v454_v57 = vmul.f32 %v1540_v6, %v351_v52 }
  0x52   : > { %v455_v61 = vmul.f32 %v1536_v4, %v352_v56  ;;  %v528_v11 = vadd.f32 %v527_v48, %v418_v47  ;;  %v453_v47 = vmul.f32 %v1538_v5, %v350_v43  ;;  %v435_v56 = vmul.f32 %v1538_v5, %v332_v36  ;;  %v601_v36 = vld [vmem:[%s1927_s2 + $0x30] sm:$0xff] }
  0x53   : > { %v583_v7 = vadd.f32 %v459_v54, %v458_v53  ;;  %v339_v53 = vld [vmem:[#allocation3 + $0x238] sm:$0xff]  ;;  %v336_v54 = vld [vmem:[#allocation3 + $0x220] sm:$0xff]  ;;  %v436_v2 = vmul.f32 %v1540_v6, %v333_v59 }
  0x54   : > { %v579_v14 = vadd.f32 %v456_v62, %v455_v61  ;;  %v442_v62 = vmul.f32 %v1540_v6, %v339_v53 }
  0x55   : > { %v1622_v19 = vadd.f32 %v583_v7, %v460_v55  ;;  %v434_v55 = vmul.f32 %v1536_v4, %v331_v29  ;;  %v358_v7 = vld [vmem:[#allocation3 + $0x2d0] sm:$0xff] }
  0x56   : > { %v1625_v23 = vadd.f32 %v579_v14, %v457_v13 }
  0x57   : > { %v551_v3 = vadd.f32 %v435_v56, %v434_v55 }
  0x58   : > { %525 = vadd.xlane.f32.xlu2 %v524_v10  ;;  %v444_v10 = vmul.f32 %v1538_v5, %v341_v63  ;;  %v559_v63 = vadd.f32 %v441_v44, %v440_v31 }
  0x59   : > { %521 = vadd.xlane.f32.xlu1 %v520_v21  ;;  %517 = vadd.xlane.f32.xlu0 %v516_v27  ;;  %v430_v21 = vmul.f32 %v1540_v6, %v327_v1  ;;  %v427_v27 = vmul.f32 %v1540_v6, %v324_v12  ;;  %v555_v1 = vadd.f32 %v438_v49, %v437_v45  ;;  %v605_v49 = vld [vmem:[%s1927_s2 + $0x50] sm:$0xff] }
  0x5a   : > { %v563_v20 = vadd.f32 %v444_v10, %v443_v0  ;;  %v439_v0 = vmul.f32 %v1540_v6, %v336_v54  ;;  %v461_v10 = vmul.f32 %v1536_v4, %v358_v7  ;;  %v463_v12 = vmul.f32 %v1540_v6, %v360_v9  ;;  %v597_v6 = vld [vmem:[%s1927_s2 + $0x10] sm:$0xff] }
  0x5b   : > { %v544_v48 = vadd.f32 %v543_v24, %v430_v21  ;;  %v540_v50 = vadd.f32 %v539_v28, %v427_v27  ;;  %v560_v13 = vadd.f32 %v559_v63, %v442_v62  ;;  %v552_v16 = vadd.f32 %v551_v3, %v436_v2  ;;  %v598_v24 = vld [vmem:[%s1927_s2 + $0x18] sm:$0xff]  ;;  %v607_v62 = vld [vmem:[%s1927_s2 + $0x60] sm:$0xff] }
  0x5c   : > { %v564_v30 = vadd.f32 %v563_v20, %v445_v15  ;;  %v556_v15 = vadd.f32 %v555_v1, %v439_v0 }
  0x60   : > { %537 = vadd.xlane.f32.xlu2 %v536_v40  ;;  %v465_v40 = vmul.f32 %v1538_v5, %v362_v33 }
  0x61   : > { %533 = vadd.xlane.f32.xlu1 %v532_v46  ;;  %529 = vadd.xlane.f32.xlu0 %v528_v11  ;;  %v452_v46 = vmul.f32 %v1536_v4, %v349_v42  ;;  %v462_v11 = vmul.f32 %v1538_v5, %v359_v8  ;;  %v1388_v4 = vmov 0   ;;  %v599_v5 = vld [vmem:[%s1927_s2 + $0x20] sm:$0xff] }
  0x62   : > { %v591_v51 = vadd.f32 %v465_v40, %v464_v38  ;;  %1234 = vset.pattern.permute.xlu1 %v1388_v4  ;;  %1232 = vset.pattern.permute.xlu2 %v1388_v4 }
  0x63   : > { %v575_v58 = vadd.f32 %v453_v47, %v452_v46  ;;  %v587_v14 = vadd.f32 %v462_v11, %v461_v10  ;;  %1233 = vset.pattern.permute.xlu0 %v1388_v4  ;;  %v612_v11 = vld [vmem:[%s1927_s2 + $0x88] sm:$0xff] }
  0x64   : > { %v592_v60 = vadd.f32 %v591_v51, %v466_v41 }
  0x65   : > { %v576_v61 = vadd.f32 %v575_v58, %v454_v57  ;;  %v588_v17 = vadd.f32 %v587_v14, %v463_v12  ;;  %v611_v12 = vld [vmem:[%s1927_s2 + $0x80] sm:$0xff] }
  0x68   : > { %549 = vadd.xlane.f32.xlu2 %v548_v35  ;;  %v602_v35 = vld [vmem:[%s1927_s2 + $0x38] sm:$0xff] }
  0x69   : > { %545 = vadd.xlane.f32.xlu1 %v544_v48  ;;  %541 = vadd.xlane.f32.xlu0 %v540_v50  ;;  %v606_v48 = vld [vmem:[%s1927_s2 + $0x58] sm:$0xff]  ;;  %v604_v50 = vld [vmem:[%s1927_s2 + $0x48] sm:$0xff] }
  0x70   : > { %561 = vadd.xlane.f32.xlu2 %v560_v13  ;;  %v610_v13 = vld [vmem:[%s1927_s2 + $0x78] sm:$0xff] }
  0x71   : > { %557 = vadd.xlane.f32.xlu1 %v556_v15  ;;  %553 = vadd.xlane.f32.xlu0 %v552_v16 }
  0x78   : > { %573 = vadd.xlane.f32.xlu2 %v1601_v37  ;;  %v595_v37 = vld [vmem:[%s1927_s2] sm:$0xff] }
  0x79   : > { %569 = vadd.xlane.f32.xlu1 %v1603_v39  ;;  %565 = vadd.xlane.f32.xlu0 %v564_v30 }
  0x80   : > { %585 = vadd.xlane.f32.xlu2 %v1622_v19 }
  0x81   : > { %581 = vadd.xlane.f32.xlu1 %v1625_v23  ;;  %577 = vadd.xlane.f32.xlu0 %v576_v61  ;;  %v600_v23 = vld [vmem:[%s1927_s2 + $0x28] sm:$0xff] }
  0x82   : > { %v608_v61 = vld [vmem:[%s1927_s2 + $0x68] sm:$0xff] }
  0x89   : > { %593 = vadd.xlane.f32.xlu1 %v592_v60  ;;  %589 = vadd.xlane.f32.xlu0 %v588_v17  ;;  %v609_v60 = vld [vmem:[%s1927_s2 + $0x70] sm:$0xff] }
  0xab   : > { %v486_v39 = vpop.xlane.xlu2 %485 }
  0xac   : > { %v631_v18 = vadd.f32 %v599_v5, %v486_v39  ;;  %v478_v19 = vpop.xlane.xlu1 %477  ;;  %v470_v20 = vpop.xlane.xlu0 %469 }
  0xad   : > { %v629_v21 = vadd.f32 %v597_v6, %v478_v19  ;;  %v627_v22 = vadd.f32 %v595_v37, %v470_v20  ;;  %v614_v19 = vld [vmem:[%s1927_s2 + $0x98] sm:$0xff]  ;;  %v613_v20 = vld [vmem:[%s1927_s2 + $0x90] sm:$0xff] }
  0xae   : > { %664 = vst.msk [vmem:[#allocation2 + $0x20] sm:$0xff] %vm659_vm0, %v631_v18  ;;  %v615_v18 = vld [vmem:[%s1927_s2 + $0xa0] sm:$0xff] }
  0xaf   : > { %662 = vst.msk [vmem:[#allocation2 + $0x10] sm:$0xff] %vm659_vm0, %v629_v21 }
  0xb0   : > { %660 = vst.msk [vmem:[#allocation2] sm:$0xff] %vm659_vm0, %v627_v22 }
  0xb3   : > { %v490_v26 = vpop.xlane.xlu2 %489 }
  0xb4   : > { %v632_v27 = vadd.f32 %v600_v23, %v490_v26  ;;  %v482_v28 = vpop.xlane.xlu1 %481  ;;  %v474_v29 = vpop.xlane.xlu0 %473 }
  0xb5   : > { %v630_v30 = vadd.f32 %v598_v24, %v482_v28  ;;  %v628_v31 = vadd.f32 %v596_v25, %v474_v29  ;;  %v696_v59 = vld [vmem:[#allocation2 + $0x20] sm:$0xff] }
  0xb6   : > { %665 = vst.msk [vmem:[#allocation2 + $0x28] sm:$0xff] %vm659_vm0, %v632_v27  ;;  %v694_v32 = vld [vmem:[#allocation2 + $0x10] sm:$0xff] }
  0xb7   : > { %663 = vst.msk [vmem:[#allocation2 + $0x18] sm:$0xff] %vm659_vm0, %v630_v30  ;;  %768 = vperm.xlu1 %1234, %v694_v32   ;;  %v692_v33 = vld [vmem:[#allocation2] sm:$0xff]  ;;  %v618_v30 = vld [vmem:[%s1927_s2 + $0xb8] sm:$0xff]  ;;  %v616_v32 = vld [vmem:[%s1927_s2 + $0xa8] sm:$0xff] }
  0xb8   : > { %661 = vst.msk [vmem:[#allocation2 + $0x8] sm:$0xff] %vm659_vm0, %v628_v31  ;;  %758 = vperm.xlu2 %1232, %v692_v33   ;;  %v617_v31 = vld [vmem:[%s1927_s2 + $0xb0] sm:$0xff] }
  0xbb   : > { %v502_v38 = vpop.xlane.xlu2 %501 }
  0xbc   : > { %v635_v40 = vadd.f32 %v603_v34, %v502_v38  ;;  %v498_v41 = vpop.xlane.xlu1 %497  ;;  %v494_v42 = vpop.xlane.xlu0 %493 }
  0xbd   : > { %v634_v43 = vadd.f32 %v602_v35, %v498_v41  ;;  %v697_v44 = vld [vmem:[#allocation2 + $0x28] sm:$0xff]  ;;  %v633_v45 = vadd.f32 %v601_v36, %v494_v42 }
  0xbe   : > { %668 = vst.msk [vmem:[#allocation2 + $0x40] sm:$0xff] %vm659_vm0, %v635_v40  ;;  %v695_v46 = vld [vmem:[#allocation2 + $0x18] sm:$0xff] }
  0xbf   : > { %667 = vst.msk [vmem:[#allocation2 + $0x38] sm:$0xff] %vm659_vm0, %v634_v43  ;;  %783 = vperm.xlu1 %1234, %v697_v44   ;;  %v693_v47 = vld [vmem:[#allocation2 + $0x8] sm:$0xff]  ;;  %v621_v44 = vld [vmem:[%s1927_s2 + $0xd0] sm:$0xff] }
  0xc0   : > { %773 = vperm.xlu2 %1232, %v695_v46   ;;  %763 = vperm.xlu0 %1233, %v693_v47   ;;  %666 = vst.msk [vmem:[#allocation2 + $0x30] sm:$0xff] %vm659_vm0, %v633_v45  ;;  %v620_v45 = vld [vmem:[%s1927_s2 + $0xc8] sm:$0xff]  ;;  %v619_v46 = vld [vmem:[%s1927_s2 + $0xc0] sm:$0xff] }
  0xc3   : > { %v514_v51 = vpop.xlane.xlu2 %513 }
  0xc4   : > { %v638_v52 = vadd.f32 %v606_v48, %v514_v51  ;;  %v510_v53 = vpop.xlane.xlu1 %509  ;;  %v506_v54 = vpop.xlane.xlu0 %505 }
  0xc5   : > { %v637_v55 = vadd.f32 %v605_v49, %v510_v53  ;;  %v700_v56 = vld [vmem:[#allocation2 + $0x40] sm:$0xff]  ;;  %v636_v57 = vadd.f32 %v604_v50, %v506_v54 }
  0xc6   : > { %671 = vst.msk [vmem:[#allocation2 + $0x58] sm:$0xff] %vm659_vm0, %v638_v52  ;;  %v699_v58 = vld [vmem:[#allocation2 + $0x38] sm:$0xff] }
  0xc7   : > { %670 = vst.msk [vmem:[#allocation2 + $0x50] sm:$0xff] %vm659_vm0, %v637_v55  ;;  %793 = vperm.xlu1 %1234, %v699_v58   ;;  %v698_v8 = vld [vmem:[#allocation2 + $0x30] sm:$0xff]  ;;  %v622_v58 = vld [vmem:[%s1927_s2 + $0xd8] sm:$0xff] }
  0xc8   : > { %778 = vperm.xlu2 %1232, %v696_v59   ;;  %798 = vperm.xlu0 %1233, %v700_v56   ;;  %669 = vst.msk [vmem:[#allocation2 + $0x48] sm:$0xff] %vm659_vm0, %v636_v57  ;;  %v624_v56 = vld [vmem:[%s1927_s2 + $0xe8] sm:$0xff]  ;;  %v623_v57 = vld [vmem:[%s1927_s2 + $0xe0] sm:$0xff] }
  0xcb   : > { %v526_v63 = vpop.xlane.xlu2 %525 }
  0xcc   : > { %v641_v0 = vadd.f32 %v609_v60, %v526_v63  ;;  %v522_v1 = vpop.xlane.xlu1 %521  ;;  %v518_v2 = vpop.xlane.xlu0 %517 }
  0xcd   : > { %v640_v3 = vadd.f32 %v608_v61, %v522_v1  ;;  %v703_v7 = vld [vmem:[#allocation2 + $0x58] sm:$0xff]  ;;  %v639_v9 = vadd.f32 %v607_v62, %v518_v2 }
  0xce   : > { %674 = vst.msk [vmem:[#allocation2 + $0x70] sm:$0xff] %vm659_vm0, %v641_v0  ;;  %v702_v10 = vld [vmem:[#allocation2 + $0x50] sm:$0xff] }
  0xcf   : > { %673 = vst.msk [vmem:[#allocation2 + $0x68] sm:$0xff] %vm659_vm0, %v640_v3  ;;  %808 = vperm.xlu1 %1234, %v702_v10   ;;  %v701_v6 = vld [vmem:[#allocation2 + $0x48] sm:$0xff] }
  0xd0   : > { %813 = vperm.xlu0 %1233, %v703_v7   ;;  %788 = vperm.xlu2 %1232, %v698_v8   ;;  %672 = vst.msk [vmem:[#allocation2 + $0x60] sm:$0xff] %vm659_vm0, %v639_v9  ;;  %v626_v7 = vld [vmem:[%s1927_s2 + $0xf8] sm:$0xff]  ;;  %v625_v8 = vld [vmem:[%s1927_s2 + $0xf0] sm:$0xff] }
  0xd3   : > { %v538_v14 = vpop.xlane.xlu2 %537 }
  0xd4   : > { %v644_v15 = vadd.f32 %v612_v11, %v538_v14  ;;  %v534_v16 = vpop.xlane.xlu1 %533  ;;  %v530_v17 = vpop.xlane.xlu0 %529 }
  0xd5   : > { %v643_v4 = vadd.f32 %v611_v12, %v534_v16  ;;  %v706_v5 = vld [vmem:[#allocation2 + $0x70] sm:$0xff]  ;;  %v642_v37 = vadd.f32 %v610_v13, %v530_v17 }
  0xd6   : > { %677 = vst.msk [vmem:[#allocation2 + $0x88] sm:$0xff] %vm659_vm0, %v644_v15  ;;  %v705_v39 = vld [vmem:[#allocation2 + $0x68] sm:$0xff] }
  0xd7   : > { %676 = vst.msk [vmem:[#allocation2 + $0x80] sm:$0xff] %vm659_vm0, %v643_v4  ;;  %823 = vperm.xlu1 %1234, %v705_v39   ;;  %v704_v27 = vld [vmem:[#allocation2 + $0x60] sm:$0xff] }
  0xd8   : > { %828 = vperm.xlu0 %1233, %v706_v5   ;;  %803 = vperm.xlu2 %1232, %v701_v6   ;;  %675 = vst.msk [vmem:[#allocation2 + $0x78] sm:$0xff] %vm659_vm0, %v642_v37 }
  0xdb   : > { %v550_v21 = vpop.xlane.xlu2 %549 }
  0xdc   : > { %v647_v22 = vadd.f32 %v615_v18, %v550_v21  ;;  %v546_v23 = vpop.xlane.xlu1 %545  ;;  %v542_v24 = vpop.xlane.xlu0 %541 }
  0xdd   : > { %v646_v25 = vadd.f32 %v614_v19, %v546_v23  ;;  %v709_v26 = vld [vmem:[#allocation2 + $0x88] sm:$0xff]  ;;  %v645_v28 = vadd.f32 %v613_v20, %v542_v24 }
  0xde   : > { %680 = vst.msk [vmem:[#allocation2 + $0xa0] sm:$0xff] %vm659_vm0, %v647_v22  ;;  %v708_v29 = vld [vmem:[#allocation2 + $0x80] sm:$0xff] }
  0xdf   : > { %679 = vst.msk [vmem:[#allocation2 + $0x98] sm:$0xff] %vm659_vm0, %v646_v25  ;;  %870 = vperm.xlu1 %1234, %v708_v29   ;;  %v707_v41 = vld [vmem:[#allocation2 + $0x78] sm:$0xff]  ;;  %v729_v29 = vld [vmem:[%s1525_s1 + $0x28] sm:$0xff] }
  0xe0   : > { %875 = vperm.xlu0 %1233, %v709_v26   ;;  %818 = vperm.xlu2 %1232, %v704_v27   ;;  %678 = vst.msk [vmem:[#allocation2 + $0x90] sm:$0xff] %vm659_vm0, %v645_v28  ;;  %v728_v28 = vld [vmem:[%s1525_s1 + $0x20] sm:$0xff] }
  0xe3   : > { %v562_v33 = vpop.xlane.xlu2 %561 }
  0xe4   : > { %v650_v34 = vadd.f32 %v618_v30, %v562_v33  ;;  %v558_v35 = vpop.xlane.xlu1 %557  ;;  %v554_v36 = vpop.xlane.xlu0 %553 }
  0xe5   : > { %v649_v38 = vadd.f32 %v617_v31, %v558_v35  ;;  %v712_v40 = vld [vmem:[#allocation2 + $0xa0] sm:$0xff]  ;;  %v648_v42 = vadd.f32 %v616_v32, %v554_v36 }
  0xe6   : > { %683 = vst.msk [vmem:[#allocation2 + $0xb8] sm:$0xff] %vm659_vm0, %v650_v34  ;;  %v711_v43 = vld [vmem:[#allocation2 + $0x98] sm:$0xff] }
  0xe7   : > { %682 = vst.msk [vmem:[#allocation2 + $0xb0] sm:$0xff] %vm659_vm0, %v649_v38  ;;  %885 = vperm.xlu1 %1234, %v711_v43   ;;  %v710_v53 = vld [vmem:[#allocation2 + $0x90] sm:$0xff]  ;;  %v724_v38 = vld [vmem:[%s1525_s1] sm:$0xff] }
  0xe8   : > { %890 = vperm.xlu0 %1233, %v712_v40   ;;  %833 = vperm.xlu2 %1232, %v707_v41   ;;  %681 = vst.msk [vmem:[#allocation2 + $0xa8] sm:$0xff] %vm659_vm0, %v648_v42  ;;  %v725_v40 = vld [vmem:[%s1525_s1 + $0x8] sm:$0xff]  ;;  %v734_v41 = vld [vmem:[%s1525_s1 + $0x50] sm:$0xff]  ;;  %v735_v42 = vld [vmem:[%s1525_s1 + $0x58] sm:$0xff] }
  0xe9   : > { %v726_v43 = vld [vmem:[%s1525_s1 + $0x10] sm:$0xff] }
  0xeb   : > { %v574_v47 = vpop.xlane.xlu2 %573 }
  0xec   : > { %v653_v48 = vadd.f32 %v621_v44, %v574_v47  ;;  %v570_v49 = vpop.xlane.xlu1 %569  ;;  %v566_v50 = vpop.xlane.xlu0 %565 }
  0xed   : > { %v652_v51 = vadd.f32 %v620_v45, %v570_v49  ;;  %v715_v52 = vld [vmem:[#allocation2 + $0xb8] sm:$0xff]  ;;  %v651_v54 = vadd.f32 %v619_v46, %v566_v50 }
  0xee   : > { %686 = vst.msk [vmem:[#allocation2 + $0xd0] sm:$0xff] %vm659_vm0, %v653_v48  ;;  %v714_v55 = vld [vmem:[#allocation2 + $0xb0] sm:$0xff]  ;;  %v727_v46 = vld [vmem:[%s1525_s1 + $0x18] sm:$0xff] }
  0xef   : > { %685 = vst.msk [vmem:[#allocation2 + $0xc8] sm:$0xff] %vm659_vm0, %v652_v51  ;;  %900 = vperm.xlu1 %1234, %v714_v55   ;;  %v713_v1 = vld [vmem:[#allocation2 + $0xa8] sm:$0xff] }
  0xf0   : > { %905 = vperm.xlu0 %1233, %v715_v52   ;;  %880 = vperm.xlu2 %1232, %v710_v53   ;;  %684 = vst.msk [vmem:[#allocation2 + $0xc0] sm:$0xff] %vm659_vm0, %v651_v54 }
  0xf3   : > { %v586_v59 = vpop.xlane.xlu2 %585 }
  0xf4   : > { %v656_v60 = vadd.f32 %v624_v56, %v586_v59  ;;  %v582_v61 = vpop.xlane.xlu1 %581  ;;  %v578_v62 = vpop.xlane.xlu0 %577  ;;  %v730_v59 = vld [vmem:[%s1525_s1 + $0x30] sm:$0xff] }
  0xf5   : > { %v655_v63 = vadd.f32 %v623_v57, %v582_v61  ;;  %v718_v0 = vld [vmem:[#allocation2 + $0xd0] sm:$0xff]  ;;  %v654_v2 = vadd.f32 %v622_v58, %v578_v62  ;;  %v740_v62 = vld [vmem:[%s1525_s1 + $0x80] sm:$0xff] }
  0xf6   : > { %689 = vst.msk [vmem:[#allocation2 + $0xe8] sm:$0xff] %vm659_vm0, %v656_v60  ;;  %v717_v3 = vld [vmem:[#allocation2 + $0xc8] sm:$0xff]  ;;  %v731_v60 = vld [vmem:[%s1525_s1 + $0x38] sm:$0xff] }
  0xf7   : > { %688 = vst.msk [vmem:[#allocation2 + $0xe0] sm:$0xff] %vm659_vm0, %v655_v63  ;;  %915 = vperm.xlu1 %1234, %v717_v3   ;;  %v716_v13 = vld [vmem:[#allocation2 + $0xc0] sm:$0xff]  ;;  %v741_v63 = vld [vmem:[%s1525_s1 + $0x88] sm:$0xff] }
  0xf8   : > { %920 = vperm.xlu0 %1233, %v718_v0   ;;  %895 = vperm.xlu2 %1232, %v713_v1   ;;  %687 = vst.msk [vmem:[#allocation2 + $0xd8] sm:$0xff] %vm659_vm0, %v654_v2  ;;  %v732_v0 = vld [vmem:[%s1525_s1 + $0x40] sm:$0xff]  ;;  %v733_v3 = vld [vmem:[%s1525_s1 + $0x48] sm:$0xff] }
  0xfc   : > { %v594_v9 = vpop.xlane.xlu1 %593  ;;  %v590_v10 = vpop.xlane.xlu0 %589 }
  0xfd   : > { %v658_v11 = vadd.f32 %v626_v7, %v594_v9  ;;  %v721_v12 = vld [vmem:[#allocation2 + $0xe8] sm:$0xff]  ;;  %v657_v14 = vadd.f32 %v625_v8, %v590_v10 }
  0xfe   : > { %v720_v15 = vld [vmem:[#allocation2 + $0xe0] sm:$0xff] }
  0xff   : > { %691 = vst.msk [vmem:[#allocation2 + $0xf8] sm:$0xff] %vm659_vm0, %v658_v11  ;;  %930 = vperm.xlu1 %1234, %v720_v15   ;;  %v719_v16 = vld [vmem:[#allocation2 + $0xd8] sm:$0xff] }
 0x100   : > { %935 = vperm.xlu0 %1233, %v721_v12   ;;  %910 = vperm.xlu2 %1232, %v716_v13   ;;  %690 = vst.msk [vmem:[#allocation2 + $0xf0] sm:$0xff] %vm659_vm0, %v657_v14 }
 0x106   : > { %v723_v17 = vld [vmem:[#allocation2 + $0xf8] sm:$0xff] }
 0x107   : > { %945 = vperm.xlu1 %1234, %v723_v17   ;;  %v722_v4 = vld [vmem:[#allocation2 + $0xf0] sm:$0xff] }
 0x108   : > { %925 = vperm.xlu2 %1232, %v719_v16  }
 0x110   : > { %940 = vperm.xlu2 %1232, %v722_v4  }
 0x112   : > { %v759_v5 = vpop.permute.xlu2 %758 }
 0x113   : > { %v836_v44 = vmul.f32 %v759_v5, %v724_v38  ;;  %v837_v45 = vmul.f32 %v759_v5, %v725_v40  ;;  %v736_v5 = vld [vmem:[%s1525_s1 + $0x60] sm:$0xff] }
 0x11a   : > { %v774_v6 = vpop.permute.xlu2 %773 }
 0x11b   : > { %v842_v1 = vmul.f32 %v774_v6, %v730_v59  ;;  %v843_v2 = vmul.f32 %v774_v6, %v731_v60  ;;  %v737_v6 = vld [vmem:[%s1525_s1 + $0x68] sm:$0xff] }
 0x122   : > { %v1778_v37 = vpop.permute.xlu2 %778 }
 0x123   : > { %v844_v10 = vmul.f32 %v1778_v37, %v732_v0  ;;  %v845_v15 = vmul.f32 %v1778_v37, %v733_v3 }
 0x129   : > { %v769_v39 = vpop.permute.xlu1 %768 }
 0x12a   : > { %v1780_v18 = vpop.permute.xlu2 %788  ;;  %v840_v30 = vmul.f32 %v769_v39, %v728_v28  ;;  %v841_v31 = vmul.f32 %v769_v39, %v729_v29  ;;  %v739_v29 = vld [vmem:[%s1525_s1 + $0x78] sm:$0xff] }
 0x12b   : > { %v848_v28 = vmul.f32 %v1780_v18, %v736_v5  ;;  %v849_v37 = vmul.f32 %v1780_v18, %v737_v6 }
 0x131   : > { %v784_v19 = vpop.permute.xlu1 %783 }
 0x132   : > { %v1782_v20 = vpop.permute.xlu2 %803  ;;  %v764_v21 = vpop.permute.xlu0 %763  ;;  %v846_v47 = vmul.f32 %v784_v19, %v734_v41  ;;  %v847_v48 = vmul.f32 %v784_v19, %v735_v42  ;;  %v746_v19 = vld [vmem:[%s1525_s1 + $0xb0] sm:$0xff] }
 0x133   : > { %v838_v50 = vmul.f32 %v764_v21, %v726_v43  ;;  %v839_v55 = vmul.f32 %v764_v21, %v727_v46  ;;  %v747_v21 = vld [vmem:[%s1525_s1 + $0xb8] sm:$0xff] }
 0x139   : > { %v1784_v22 = vpop.permute.xlu1 %793 }
 0x13a   : > { %v1786_v23 = vpop.permute.xlu2 %818  ;;  %v799_v24 = vpop.permute.xlu0 %798  ;;  %v851_v41 = vmul.f32 %v1784_v22, %v739_v29 }
 0x13b   : > { %v852_v7 = vmul.f32 %v799_v24, %v740_v62  ;;  %v853_v8 = vmul.f32 %v799_v24, %v741_v63  ;;  %v738_v24 = vld [vmem:[%s1525_s1 + $0x70] sm:$0xff]  ;;  %v748_v62 = vld [vmem:[%s1525_s1 + $0xc0] sm:$0xff]  ;;  %v749_v63 = vld [vmem:[%s1525_s1 + $0xc8] sm:$0xff] }
 0x13c   : > { %v860_v3 = vmul.f32 %v1786_v23, %v748_v62 }
 0x141   : > { %v1788_v25 = vpop.permute.xlu1 %808 }
 0x142   : > { %v1790_v26 = vpop.permute.xlu2 %833  ;;  %v1792_v27 = vpop.permute.xlu0 %813 }
 0x149   : > { %v1796_v32 = vpop.permute.xlu1 %823 }
 0x14a   : > { %v881_v33 = vpop.permute.xlu2 %880  ;;  %v1798_v34 = vpop.permute.xlu0 %828 }
 0x14b   : > { %v952_v35 = vadd.f32 %v881_v33, %v840_v30  ;;  %v953_v36 = vadd.f32 %v881_v33, %v841_v31  ;;  %v858_v30 = vmul.f32 %v1792_v27, %v746_v19  ;;  %v859_v31 = vmul.f32 %v1792_v27, %v747_v21 }
 0x14d   : > { %984 = vst [vmem:[%s1804_s7 + $0x20] sm:$0xff] %v952_v35  ;;  %v850_v35 = vmul.f32 %v1784_v22, %v738_v24 }
 0x14e   : > { %985 = vst [vmem:[%s1804_s7 + $0x28] sm:$0xff] %v953_v36 }
 0x151   : > { %v871_v49 = vpop.permute.xlu1 %870 }
 0x152   : > { %v948_v51 = vadd.f32 %v871_v49, %v836_v44  ;;  %v949_v52 = vadd.f32 %v871_v49, %v837_v45  ;;  %v896_v53 = vpop.permute.xlu2 %895  ;;  %v876_v54 = vpop.permute.xlu0 %875  ;;  %v742_v44 = vld [vmem:[%s1525_s1 + $0x90] sm:$0xff]  ;;  %v743_v45 = vld [vmem:[%s1525_s1 + $0x98] sm:$0xff]  ;;  %v744_v49 = vld [vmem:[%s1525_s1 + $0xa0] sm:$0xff] }
 0x153   : > { %v958_v56 = vadd.f32 %v896_v53, %v846_v47  ;;  %v959_v57 = vadd.f32 %v896_v53, %v847_v48  ;;  %v950_v58 = vadd.f32 %v876_v54, %v838_v50  ;;  %v951_v61 = vadd.f32 %v876_v54, %v839_v55  ;;  %v752_v47 = vld [vmem:[%s1525_s1 + $0xe0] sm:$0xff]  ;;  %v753_v48 = vld [vmem:[%s1525_s1 + $0xe8] sm:$0xff] }
 0x154   : > { %980 = vst [vmem:[%s1804_s7] sm:$0xff] %v948_v51  ;;  %v854_v50 = vmul.f32 %v1782_v20, %v742_v44  ;;  %v855_v22 = vmul.f32 %v1782_v20, %v743_v45  ;;  %v745_v51 = vld [vmem:[%s1525_s1 + $0xa8] sm:$0xff]  ;;  %v865_v53 = vmul.f32 %v1798_v34, %v753_v48  ;;  %v856_v55 = vmul.f32 %v1788_v25, %v744_v49 }
 0x155   : > { %981 = vst [vmem:[%s1804_s7 + $0x8] sm:$0xff] %v949_v52  ;;  %v864_v52 = vmul.f32 %v1798_v34, %v752_v47  ;;  %v857_v59 = vmul.f32 %v1788_v25, %v745_v51  ;;  %v861_v25 = vmul.f32 %v1786_v23, %v749_v63  ;;  %v754_v23 = vld [vmem:[%s1525_s1 + $0xf0] sm:$0xff] }
 0x156   : > { %990 = vst [vmem:[%s1804_s7 + $0x50] sm:$0xff] %v958_v56 }
 0x157   : > { %991 = vst [vmem:[%s1804_s7 + $0x58] sm:$0xff] %v959_v57 }
 0x158   : > { %982 = vst [vmem:[%s1804_s7 + $0x10] sm:$0xff] %v950_v58 }
 0x159   : > { %983 = vst [vmem:[%s1804_s7 + $0x18] sm:$0xff] %v951_v61  ;;  %v886_v9 = vpop.permute.xlu1 %885 }
 0x15a   : > { %v954_v11 = vadd.f32 %v886_v9, %v842_v1  ;;  %v955_v12 = vadd.f32 %v886_v9, %v843_v2  ;;  %v911_v13 = vpop.permute.xlu2 %910  ;;  %v891_v14 = vpop.permute.xlu0 %890  ;;  %v750_v1 = vld [vmem:[%s1525_s1 + $0xd0] sm:$0xff]  ;;  %v751_v2 = vld [vmem:[%s1525_s1 + $0xd8] sm:$0xff] }
 0x15b   : > { %v964_v16 = vadd.f32 %v911_v13, %v852_v7  ;;  %v965_v17 = vadd.f32 %v911_v13, %v853_v8  ;;  %v956_v4 = vadd.f32 %v891_v14, %v844_v10  ;;  %v957_v39 = vadd.f32 %v891_v14, %v845_v15  ;;  %v755_v15 = vld [vmem:[%s1525_s1 + $0xf8] sm:$0xff]  ;;  %s1311_s1 = scalar_lea.hbm %s1310_s9, 256 }
 0x15c   : > { %986 = vst [vmem:[%s1804_s7 + $0x30] sm:$0xff] %v954_v11  ;;  %v862_v7 = vmul.f32 %v1796_v32, %v750_v1  ;;  %v863_v8 = vmul.f32 %v1796_v32, %v751_v2  ;;  %v866_v32 = vmul.f32 %v1790_v26, %v754_v23  ;;  %p1312_p1 = scmp.ne.s32.totalorder %s1310_s9, %s1311_s1  ;;  %p1317_p12 = scmp.lt.s32.totalorder %s1315_s27, %s1311_s1 }
 0x15d   : > { %987 = vst [vmem:[%s1804_s7 + $0x38] sm:$0xff] %v955_v12 }
 0x15e   : > { %996 = vst [vmem:[%s1804_s7 + $0x80] sm:$0xff] %v964_v16  ;;  %v867_v16 = vmul.f32 %v1790_v26, %v755_v15  ;;  %p1313_p4 = pnand %p1312_p1, %p1495_p5  ;;  %p1318_p13 = por %p1317_p12, %p1316_p10 }
 0x15f   : > { %997 = vst [vmem:[%s1804_s7 + $0x88] sm:$0xff] %v965_v17 }
 0x160   : > { %988 = vst [vmem:[%s1804_s7 + $0x40] sm:$0xff] %v956_v4  ;;  %p1314_p8 = pneg %p1313_p4 }
 0x161   : > { %989 = vst [vmem:[%s1804_s7 + $0x48] sm:$0xff] %v957_v39  ;;  %v901_v33 = vpop.permute.xlu1 %900 }
 0x162   : > { %v960_v36 = vadd.f32 %v901_v33, %v848_v28  ;;  %v961_v38 = vadd.f32 %v901_v33, %v849_v37  ;;  %v926_v18 = vpop.permute.xlu2 %925  ;;  %v906_v40 = vpop.permute.xlu0 %905  ;;  %p1319_p0 = pnand %p1318_p13, %p1314_p8 }
 0x163   : > { %v970_v42 = vadd.f32 %v926_v18, %v858_v30  ;;  %v971_v43 = vadd.f32 %v926_v18, %v859_v31  ;;  %v962_v27 = vadd.f32 %v906_v40, %v850_v35  ;;  %v963_v46 = vadd.f32 %v906_v40, %v851_v41 }
 0x164   : > { %992 = vst [vmem:[%s1804_s7 + $0x60] sm:$0xff] %v960_v36 }
 0x165   : > { %993 = vst [vmem:[%s1804_s7 + $0x68] sm:$0xff] %v961_v38 }
 0x166   : > { %1002 = vst [vmem:[%s1804_s7 + $0xb0] sm:$0xff] %v970_v42 }
 0x167   : > { %1003 = vst [vmem:[%s1804_s7 + $0xb8] sm:$0xff] %v971_v43 }
 0x168   : > { %994 = vst [vmem:[%s1804_s7 + $0x70] sm:$0xff] %v962_v27 }
 0x169   : > { %995 = vst [vmem:[%s1804_s7 + $0x78] sm:$0xff] %v963_v46  ;;  %v916_v54 = vpop.permute.xlu1 %915 }
 0x16a   : > { %v966_v56 = vadd.f32 %v916_v54, %v854_v50  ;;  %v967_v57 = vadd.f32 %v916_v54, %v855_v22  ;;  %v941_v20 = vpop.permute.xlu2 %940  ;;  %v921_v58 = vpop.permute.xlu0 %920 }
 0x16b   : > { %v976_v60 = vadd.f32 %v941_v20, %v864_v52  ;;  %v977_v61 = vadd.f32 %v941_v20, %v865_v53  ;;  %v968_v34 = vadd.f32 %v921_v58, %v856_v55  ;;  %v969_v0 = vadd.f32 %v921_v58, %v857_v59 }
 0x16c   : > { %998 = vst [vmem:[%s1804_s7 + $0x90] sm:$0xff] %v966_v56 }
 0x16d   : > { %999 = vst [vmem:[%s1804_s7 + $0x98] sm:$0xff] %v967_v57 }
 0x16e   : > { %1008 = vst [vmem:[%s1804_s7 + $0xe0] sm:$0xff] %v976_v60 }
 0x16f   : > { %1009 = vst [vmem:[%s1804_s7 + $0xe8] sm:$0xff] %v977_v61 }
 0x170   : > { %1000 = vst [vmem:[%s1804_s7 + $0xa0] sm:$0xff] %v968_v34 }
 0x171   : > { %1001 = vst [vmem:[%s1804_s7 + $0xa8] sm:$0xff] %v969_v0  ;;  %v931_v9 = vpop.permute.xlu1 %930 }
 0x172   : > { %v972_v10 = vadd.f32 %v931_v9, %v860_v3  ;;  %v973_v11 = vadd.f32 %v931_v9, %v861_v25  ;;  %v936_v12 = vpop.permute.xlu0 %935 }
 0x173   : > { %v974_v13 = vadd.f32 %v936_v12, %v862_v7  ;;  %v975_v14 = vadd.f32 %v936_v12, %v863_v8 }
 0x174   : > { %1004 = vst [vmem:[%s1804_s7 + $0xc0] sm:$0xff] %v972_v10 }
 0x175   : > { %1005 = vst [vmem:[%s1804_s7 + $0xc8] sm:$0xff] %v973_v11 }
 0x176   : > { %1006 = vst [vmem:[%s1804_s7 + $0xd0] sm:$0xff] %v974_v13 }
 0x177   : > { %1007 = vst [vmem:[%s1804_s7 + $0xd8] sm:$0xff] %v975_v14 }
 0x179   : > { %v946_v17 = vpop.permute.xlu1 %945 }
 0x17a   : > { %v978_v4 = vadd.f32 %v946_v17, %v866_v32  ;;  %v979_v5 = vadd.f32 %v946_v17, %v867_v16 }
 0x17c   : > { %1010 = vst [vmem:[%s1804_s7 + $0xf0] sm:$0xff] %v978_v4 }
 0x17d   : > { %1011 = vst [vmem:[%s1804_s7 + $0xf8] sm:$0xff] %v979_v5 }
 0x17e   : > { %1322 = shalt.err (!%p1319_p0)
}
 0x17f   : > { %s1389_s10 = smov 256   ;;  %s1390_s29 = smov 16  }
 0x180   : > { %1158 = dma.vmem_to_hbm [thread:$0]  (%p1495_p5), %s1028_s23, 4096, %s1030_s18, %s1013_s30, %s1389_s10, %s1389_s10, %s1390_s29  }
 0x181 PF: > { %s1044_s5 = sand.u32 1, %s1361_s15   ;;  %p1169_p3 = pnand %p1136_p11, %p1465_p6 }
 0x182   : > { %s1045_s6 = scalar_lea.sflag [#allocation5], %s1044_s5 }
 0x183   : > { %p1170_p7 = pneg %p1169_p3 }
 0x185   : > { %1356 = dma.done.wait (%p1170_p7), %s1045_s6, 4096  }
 0x186   : > { %1358 = vsyncadd (%p1170_p7), %s1045_s6, 4294963200  ;;  %s21_s20 = sadd.s32 1, %s1381_s20   ;;  %s1941_s12 = sld [smem:[#allocation12_spill]] }
 0x187   : > { %p18_p9 = scmp.ge.s32.totalorder %s21_s20, 4   ;;  %s1942_s15 = smov %s1365_s16 }
 0x188   : > { %s1943_s16 = smov %s1369_s17  ;;  %s1944_s17 = smov %s1504_s22 }
 0x189   : > { %s1945_s18 = smov %s1377_s19  ;;  %20 = sbr.rel (!%p18_p9) target bundleno = 9 (0x9), region = 91 }
 0x18c   : > { %s1946_s19 = smov %s1941_s12 }
 0x18e   :  { %1051 = vsyncpa [#allocation4], 1 }
 0x18f   :  { %1053 = vsyncpa [#allocation4 + $0x1], 1 }
 0x190   :  { %1054 = vsyncpa [#allocation7], 1 }
 0x191   :  { %1056 = vsyncpa [#allocation7 + $0x1], 1 }
 0x192   :  { %1057 = vsyncpa [#allocation5], 1 }
 0x193   :  { %1059 = vsyncpa [#allocation5 + $0x1], 1 }

</bundles_post_ra>
